<compile_context>
chip_gen: v7x
topology: tpu7x:2x2x1
jax: 0.10.0
libtpu: 0.0.40
codegen_flags: <defaults>
</compile_context>

<pallas_src>
import functools

import jax
import jax.numpy as jnp
from jax.experimental import pallas as pl
from jax.experimental.pallas import tpu as pltpu


def _round_up(x, m):
    return -(-x // m) * m


def _graph_attn_bias_kernel(ab_ref, sp_ref, ei_ref, tmask_ref, tabs_ref,
                            tabe_ref, t_ref, out_ref, *,
                            S_pad, E1_pad, D, F, mh_max, GB):
    f32 = jnp.float32
    bf16 = jnp.bfloat16
    P = out_ref.shape[-1]

    # hoisted invariants: tables, graph-token term, shared vocab iota
    tab_s = tabs_ref[...]                                   # (H, S_pad) bf16
    t_term = t_ref[...] * tmask_ref[...]                    # (H,1)*(1,P) -> (H,P) f32

    rows = jax.lax.broadcasted_iota(jnp.int32, (max(S_pad, E1_pad), P), 0)
    row_s = rows[:S_pad]                                    # vocab idx on sublanes
    row_e = rows[:E1_pad]

    ab2 = 2.0 * ab_ref[...]                                 # (GB, P) f32
    sp = sp_ref[...].astype(jnp.int32)                      # (GB, P) (int16 -> int32)

    # spatial_pos_ : 0 -> 1, >1 -> x-1, clamp to multi_hop_max_dist;
    # scale folds the mean-over-F divide too (applied post-matmul, H*P muls).
    sp_ = jnp.where(sp == 0, 1, sp)
    sp_ = jnp.where(sp_ > 1, sp_ - 1, sp_)
    sp_f = jnp.clip(sp_, 0, mh_max).astype(f32)
    scale_all = 1.0 / (sp_f * float(F))                     # (GB, P)

    # GB is kept tiny (<=4) so a static unroll is fine.
    # TODO(synk): switch to lax.fori_loop here if GB*P ever gets large enough
    # to create vreg pressure.
    for g in range(GB):
        sp_g = sp[g:g + 1, :]                               # (1, P)

        # spatial one-hot -> MXU lookup. Graph-token row/col and lane padding
        # carry the sentinel index >= S_pad, so their one-hot column is zero.
        onehot_s = (row_s == sp_g).astype(bf16)             # (S_pad, P)
        bias = jnp.dot(tab_s, onehot_s,
                       preferred_element_type=f32)          # (H, P) f32

        # per-distance edge counts -> per-distance MXU lookup, f32 accumulate.
        ei_g = ei_ref[g].astype(jnp.int32)                  # (D*F, P)
        esum = None
        for d in range(D):
            cnt = (row_e == ei_g[d * F:d * F + 1, :]).astype(bf16)
            for f in range(1, F):
                cnt = cnt + (row_e == ei_g[d * F + f:d * F + f + 1, :]).astype(bf16)
            eb = jnp.dot(tabe_ref[d], cnt,
                         preferred_element_type=f32)        # (H, P) f32
            esum = eb if esum is None else esum + eb

        out_ref[g] = bias + esum * scale_all[g:g + 1, :] + ab2[g:g + 1, :] + t_term


def graph_attn_bias(attn_bias, spatial_pos, edge_input, params,
                    multi_hop_max_dist, graphs_per_block=4):
    """edge_type == 'multi_hop' forward pass."""
    G, M, _ = attn_bias.shape
    H = params["t"].shape[1]
    D = min(multi_hop_max_dist, edge_input.shape[3])
    F = edge_input.shape[-1]
    P = M * M
    P_pad = _round_up(P, 128)                       # lane-dense last dim

    E1 = params["edge_table"].shape[0]              # num_edges + 1
    S = params["sp_table"].shape[0]                 # num_spatial
    S_pad = _round_up(S, 8)
    E1_pad = _round_up(E1, 8)

    # narrow index dtype (sentinels S_pad / E1_pad must still fit)
    idx_dtype = jnp.int16 if max(S_pad, E1_pad) < 2 ** 15 else jnp.int32

    # --- precomputed lookup tables (bf16 operands for the MXU) ---------------
    Wd = params["dis_w"].reshape(-1, H, H)[:D].astype(jnp.float32)       # (D,H,H)
    Td = jnp.einsum("eh,dhk->dek",
                    params["edge_table"].astype(jnp.float32), Wd)        # (D,E1,H)
    Td = jnp.pad(Td, ((0, 0), (0, E1_pad - E1), (0, 0)))
    tab_e = jnp.transpose(Td, (0, 2, 1)).astype(jnp.bfloat16)            # (D,H,E1_pad)
    sp_tab = jnp.pad(params["sp_table"].astype(jnp.float32),
                     ((0, S_pad - S), (0, 0)))
    tab_s = sp_tab.T.astype(jnp.bfloat16)                                # (H,S_pad)

    # --- lane-dense inputs; graph-token row/col + lane pad use sentinels -----
    sp_pad = jnp.pad(spatial_pos.astype(jnp.int32), ((0, 0), (1, 0), (1, 0)),
                     constant_values=S_pad)
    sp_lan = sp_pad.reshape(G, P)
    sp_lan = jnp.pad(sp_lan, ((0, 0), (0, P_pad - P)),
                     constant_values=S_pad).astype(idx_dtype)            # (G,P_pad)

    ei = edge_input[:, :, :, :D, :].astype(jnp.int32)
    ei_pad = jnp.pad(ei, ((0, 0), (1, 0), (1, 0), (0, 0), (0, 0)),
                     constant_values=E1_pad)
    ei_lan = jnp.transpose(ei_pad, (0, 3, 4, 1, 2)).reshape(G, D * F, P)
    ei_lan = jnp.pad(ei_lan, ((0, 0), (0, 0), (0, P_pad - P)),
                     constant_values=E1_pad).astype(idx_dtype)           # (G,D*F,P_pad)

    ab_lan = attn_bias.astype(jnp.float32).reshape(G, P)
    ab_lan = jnp.pad(ab_lan, ((0, 0), (0, P_pad - P)))                   # (G,P_pad)

    # graph-token mask (row 0, or col 0 with row >= 1); shared across graphs
    rr = jnp.arange(M)[:, None]
    cc = jnp.arange(M)[None, :]
    t_mask = ((rr == 0) | ((cc == 0) & (rr >= 1))).astype(jnp.float32).reshape(1, P)
    t_mask = jnp.pad(t_mask, ((0, 0), (0, P_pad - P)))                   # (1,P_pad)
    t_col = params["t"].astype(jnp.float32).reshape(H, 1)

    # --- graph batching: keep >= 2 grid steps (v7x has 2 TensorCores/chip) ---
    GB = max(1, min(graphs_per_block, G // 2)) if G >= 2 else 1
    G_pad = _round_up(G, GB)
    if G_pad != G:
        ab_lan = jnp.pad(ab_lan, ((0, G_pad - G), (0, 0)))
        sp_lan = jnp.pad(sp_lan, ((0, G_pad - G), (0, 0)), constant_values=S_pad)
        ei_lan = jnp.pad(ei_lan, ((0, G_pad - G), (0, 0), (0, 0)),
                         constant_values=E1_pad)
    NG = G_pad // GB

    # graph batch on the sublane axis (trailing block dims == full array dims)
    ab_lan = ab_lan.reshape(NG, GB, P_pad)
    sp_lan = sp_lan.reshape(NG, GB, P_pad)
    ei_lan = ei_lan.reshape(NG, GB, D * F, P_pad)

    kernel = functools.partial(_graph_attn_bias_kernel, S_pad=S_pad,
                               E1_pad=E1_pad, D=D, F=F,
                               mh_max=multi_hop_max_dist, GB=GB)

    out = pl.pallas_call(
        kernel,
        out_shape=jax.ShapeDtypeStruct((NG, GB, H, P_pad), jnp.float32),
        grid_spec=pltpu.PrefetchScalarGridSpec(
            num_scalar_prefetch=0,
            grid=(NG,),
            in_specs=[
                pl.BlockSpec((None, GB, P_pad), lambda g: (g, 0, 0)),         # attn_bias
                pl.BlockSpec((None, GB, P_pad), lambda g: (g, 0, 0)),         # spatial_pos
                pl.BlockSpec((None, GB, D * F, P_pad), lambda g: (g, 0, 0, 0)),  # edge_input
                pl.BlockSpec((1, P_pad), lambda g: (0, 0)),                   # t_mask
                pl.BlockSpec((H, S_pad), lambda g: (0, 0)),                   # sp table^T
                pl.BlockSpec((D, H, E1_pad), lambda g: (0, 0, 0)),            # edge tables^T
                pl.BlockSpec((H, 1), lambda g: (0, 0)),                       # graph-token t
            ],
            out_specs=pl.BlockSpec((None, GB, H, P_pad), lambda g: (g, 0, 0, 0)),
        ),
        compiler_params=pltpu.CompilerParams(
            dimension_semantics=("parallel",),
            vmem_limit_bytes=48 * 1024 * 1024,   # > 16/32 MiB defaults, < v7x 64 MiB
        ),
    )(ab_lan, sp_lan, ei_lan, t_mask, tab_s, tab_e, t_col)

    out = out.reshape(G_pad, H, P_pad)[:G, :, :P]
    return out.reshape(G, H, M, M)


def reference(attn_bias, spatial_pos, edge_input, params, multi_hop_max_dist):
    """Plain-JAX mirror of the PyTorch forward (multi_hop branch)."""
    G, M, _ = attn_bias.shape
    N = M - 1
    H = params["t"].shape[1]
    D = multi_hop_max_dist

    gab = jnp.broadcast_to(attn_bias[:, None], (G, H, M, M))
    sp_bias = params["sp_table"][spatial_pos]                 # (G,N,N,H)
    sp_bias = jnp.transpose(sp_bias, (0, 3, 1, 2))
    gab = gab.at[:, :, 1:, 1:].add(sp_bias)
    t = params["t"].reshape(1, H, 1)
    gab = gab.at[:, :, 1:, 0].add(t)
    gab = gab.at[:, :, 0, :].add(t)

    sp_ = jnp.where(spatial_pos == 0, 1, spatial_pos)
    sp_ = jnp.where(sp_ > 1, sp_ - 1, sp_)
    sp_ = jnp.clip(sp_, 0, D)
    ei = edge_input[:, :, :, :D, :]
    emb = params["edge_table"][ei].mean(-2)                   # (G,N,N,D,H)
    Wd = params["dis_w"].reshape(-1, H, H)[:D]
    ef = jnp.transpose(emb, (3, 0, 1, 2, 4)).reshape(D, -1, H)
    ef = jnp.einsum("dph,dhk->dpk", ef, Wd)
    eb = ef.reshape(D, G, N, N, H).transpose(1, 2, 3, 0, 4)
    eb = eb.sum(-2) / sp_[..., None].astype(jnp.float32)
    eb = jnp.transpose(eb, (0, 3, 1, 2))
    gab = gab.at[:, :, 1:, 1:].add(eb)
    gab = gab + attn_bias[:, None]
    return gab


if __name__ == "__main__":
    # module hyper-parameters (small, consistent with the forward)
    num_heads = 8
    num_atoms = 64
    num_edges = 16
    num_spatial = 16
    num_edge_dis = 8
    multi_hop_max_dist = 4
    n_layers = 2            # only scales Linear init; no Linear here

    G, N, F = 2, 8, 3       # graphs, nodes, edge-feature slots
    M = N + 1

    key = jax.random.PRNGKey(0)
    keys = jax.random.split(key, 8)

    # deterministic parameter init (nn.Embedding -> normal std 0.02; the torch
    # init_params overwrites padding_idx rows, so row 0 is NOT zeroed)
    params = {
        "edge_table": 0.02 * jax.random.normal(
            keys[0], (num_edges + 1, num_heads), jnp.float32),
        "sp_table": 0.02 * jax.random.normal(
            keys[1], (num_spatial, num_heads), jnp.float32),
        "t": 0.02 * jax.random.normal(
            keys[2], (1, num_heads), jnp.float32),
        "dis_w": 0.02 * jax.random.normal(
            keys[3], (num_edge_dis * num_heads * num_heads, 1), jnp.float32),
    }

    # batched_data (synthetic, deterministic)
    attn_bias = jax.random.normal(keys[4], (G, M, M), jnp.float32)
    spatial_pos = jax.random.randint(keys[5], (G, N, N), 0, num_spatial)
    edge_input = jax.random.randint(keys[6], (G, N, N, 5, F), 0, num_edges + 1)
    x = jax.random.randint(keys[7], (G, N, 4), 0, num_atoms)  # only shape used

    out = graph_attn_bias(attn_bias, spatial_pos, edge_input, params,
                          multi_hop_max_dist)
    out = jax.block_until_ready(out)

    ref = reference(attn_bias, spatial_pos, edge_input, params,
                    multi_hop_max_dist)

    assert out.shape == (G, num_heads, M, M)
    assert bool(jnp.all(jnp.isfinite(out)))
    assert bool(jnp.allclose(out, ref, atol=1e-3, rtol=1e-3))
    print("KERNEL_OK")
</pallas_src>

<mosaic_0001>
module attributes {stable_mosaic.version = 11 : i64} {
  func.func @_graph_attn_bias_kernel(%arg0: i32, %arg1: memref<1x1x128xf32, #tpu.memory_space<vmem>>, %arg2: memref<1x1x128xi16, #tpu.memory_space<vmem>>, %arg3: memref<1x1x12x128xi16, #tpu.memory_space<vmem>>, %arg4: memref<1x128xf32, #tpu.memory_space<vmem>>, %arg5: memref<8x16xbf16, #tpu.memory_space<vmem>>, %arg6: memref<4x8x24xbf16, #tpu.memory_space<vmem>>, %arg7: memref<8x1xf32, #tpu.memory_space<vmem>>, %arg8: memref<1x1x8x128xf32, #tpu.memory_space<vmem>>) attributes {dimension_semantics = [#tpu.dimension_semantics<parallel>], iteration_bounds = array<i64: 2>, scalar_prefetch = 0 : i64, scratch_operands = 0 : i64, tpu.core_type = #tpu.core_type<tc>, window_params = [{transform_indices = @transform_0, window_bounds = array<i64: 1, 1, 128>}, {transform_indices = @transform_1, window_bounds = array<i64: 1, 1, 128>}, {transform_indices = @transform_2, window_bounds = array<i64: 1, 1, 12, 128>}, {pipeline_mode = #tpu.pipeline_mode<synchronous>, transform_indices = @transform_3, window_bounds = array<i64: 1, 128>}, {pipeline_mode = #tpu.pipeline_mode<synchronous>, transform_indices = @transform_4, window_bounds = array<i64: 8, 16>}, {pipeline_mode = #tpu.pipeline_mode<synchronous>, transform_indices = @transform_5, window_bounds = array<i64: 4, 8, 24>}, {pipeline_mode = #tpu.pipeline_mode<synchronous>, transform_indices = @transform_6, window_bounds = array<i64: 8, 1>}, {transform_indices = @transform_7, window_bounds = array<i64: 1, 1, 8, 128>}]} {
    %c0 = arith.constant 0 : index
    %c0_0 = arith.constant 0 : index
    %0 = vector.load %arg5[%c0, %c0_0] : memref<8x16xbf16, #tpu.memory_space<vmem>>, vector<8x16xbf16>
    %c0_1 = arith.constant 0 : index
    %c0_2 = arith.constant 0 : index
    %1 = vector.load %arg7[%c0_1, %c0_2] : memref<8x1xf32, #tpu.memory_space<vmem>>, vector<8x1xf32>
    %c0_3 = arith.constant 0 : index
    %c0_4 = arith.constant 0 : index
    %2 = vector.load %arg4[%c0_3, %c0_4] : memref<1x128xf32, #tpu.memory_space<vmem>>, vector<1x128xf32>
    %3 = vector.broadcast %1 : vector<8x1xf32> to vector<8x128xf32>
    %4 = vector.broadcast %2 : vector<1x128xf32> to vector<8x128xf32>
    %5 = arith.mulf %3, %4 : vector<8x128xf32>
    %6 = tpu.iota {dimensions = array<i32: 0>} : vector<24x128xi32>
    %7 = vector.extract_strided_slice %6 {offsets = [0, 0], sizes = [16, 128], strides = [1, 1]} : vector<24x128xi32> to vector<16x128xi32>
    %c0_5 = arith.constant 0 : index
    %c0_6 = arith.constant 0 : index
    %c0_7 = arith.constant 0 : index
    %8 = vector.load %arg1[%c0_5, %c0_6, %c0_7] : memref<1x1x128xf32, #tpu.memory_space<vmem>>, vector<1x1x128xf32>
    %9 = vector.shape_cast %8 : vector<1x1x128xf32> to vector<1x128xf32>
    %cst = arith.constant 2.000000e+00 : f32
    %10 = vector.broadcast %cst : f32 to vector<1x128xf32>
    %11 = arith.mulf %10, %9 : vector<1x128xf32>
    %c0_8 = arith.constant 0 : index
    %c0_9 = arith.constant 0 : index
    %c0_10 = arith.constant 0 : index
    %12 = vector.load %arg2[%c0_8, %c0_9, %c0_10] : memref<1x1x128xi16, #tpu.memory_space<vmem>>, vector<1x1x128xi16>
    %13 = vector.shape_cast %12 : vector<1x1x128xi16> to vector<1x128xi16>
    %14 = arith.extsi %13 : vector<1x128xi16> to vector<1x128xi32>
    %c0_i32 = arith.constant 0 : i32
    %15 = vector.broadcast %c0_i32 : i32 to vector<1x128xi32>
    %16 = arith.cmpi eq, %14, %15 : vector<1x128xi32>
    %c1_i32 = arith.constant 1 : i32
    %17 = vector.broadcast %c1_i32 : i32 to vector<1x128xi32>
    %18 = arith.select %16, %17, %14 : vector<1x128xi1>, vector<1x128xi32>
    %c1_i32_11 = arith.constant 1 : i32
    %19 = vector.broadcast %c1_i32_11 : i32 to vector<1x128xi32>
    %20 = arith.cmpi sgt, %18, %19 : vector<1x128xi32>
    %c1_i32_12 = arith.constant 1 : i32
    %21 = vector.broadcast %c1_i32_12 : i32 to vector<1x128xi32>
    %22 = arith.subi %18, %21 : vector<1x128xi32>
    %23 = arith.select %20, %22, %18 : vector<1x128xi1>, vector<1x128xi32>
    %c0_i32_13 = arith.constant 0 : i32
    %c4_i32 = arith.constant 4 : i32
    %24 = vector.broadcast %c0_i32_13 : i32 to vector<1x128xi32>
    %25 = arith.maxsi %24, %23 : vector<1x128xi32>
    %26 = vector.broadcast %c4_i32 : i32 to vector<1x128xi32>
    %27 = arith.minsi %26, %25 : vector<1x128xi32>
    %28 = arith.sitofp %27 : vector<1x128xi32> to vector<1x128xf32>
    %cst_14 = arith.constant 3.000000e+00 : f32
    %29 = vector.broadcast %cst_14 : f32 to vector<1x128xf32>
    %30 = arith.mulf %28, %29 : vector<1x128xf32>
    %cst_15 = arith.constant 1.000000e+00 : f32
    %31 = vector.broadcast %cst_15 : f32 to vector<1x128xf32>
    %32 = arith.divf %31, %30 : vector<1x128xf32>
    %33 = vector.broadcast %14 : vector<1x128xi32> to vector<16x128xi32>
    %34 = arith.cmpi eq, %7, %33 : vector<16x128xi32>
    %35 = arith.extui %34 : vector<16x128xi1> to vector<16x128xi32>
    %36 = arith.sitofp %35 : vector<16x128xi32> to vector<16x128xf32>
    %37 = arith.truncf %36 : vector<16x128xf32> to vector<16x128xbf16>
    %cst_16 = arith.constant dense<0.000000e+00> : vector<8x128xf32>
    %38 = tpu.matmul %0, %37, %cst_16 {dimension_numbers = #tpu.dot_dimension_numbers<[1], [0], [0], [1], [0, 0, 1, 1], [], []>} : vector<8x16xbf16>, vector<16x128xbf16>, vector<8x128xf32> -> vector<8x128xf32>
    %c0_17 = arith.constant 0 : index
    %c0_18 = arith.constant 0 : index
    %c0_19 = arith.constant 0 : index
    %c0_20 = arith.constant 0 : index
    %39 = vector.load %arg3[%c0_17, %c0_18, %c0_19, %c0_20] : memref<1x1x12x128xi16, #tpu.memory_space<vmem>>, vector<1x1x12x128xi16>
    %40 = vector.shape_cast %39 : vector<1x1x12x128xi16> to vector<12x128xi16>
    %41 = arith.extsi %40 : vector<12x128xi16> to vector<12x128xi32>
    %42 = vector.extract_strided_slice %41 {offsets = [0, 0], sizes = [1, 128], strides = [1, 1]} : vector<12x128xi32> to vector<1x128xi32>
    %43 = vector.broadcast %42 : vector<1x128xi32> to vector<24x128xi32>
    %44 = arith.cmpi eq, %6, %43 : vector<24x128xi32>
    %45 = arith.extui %44 : vector<24x128xi1> to vector<24x128xi32>
    %46 = arith.sitofp %45 : vector<24x128xi32> to vector<24x128xf32>
    %47 = arith.truncf %46 : vector<24x128xf32> to vector<24x128xbf16>
    %48 = vector.extract_strided_slice %41 {offsets = [1, 0], sizes = [1, 128], strides = [1, 1]} : vector<12x128xi32> to vector<1x128xi32>
    %49 = vector.broadcast %48 : vector<1x128xi32> to vector<24x128xi32>
    %50 = arith.cmpi eq, %6, %49 : vector<24x128xi32>
    %51 = arith.extui %50 : vector<24x128xi1> to vector<24x128xi32>
    %52 = arith.sitofp %51 : vector<24x128xi32> to vector<24x128xf32>
    %53 = arith.truncf %52 : vector<24x128xf32> to vector<24x128xbf16>
    %54 = arith.addf %47, %53 : vector<24x128xbf16>
    %55 = vector.extract_strided_slice %41 {offsets = [2, 0], sizes = [1, 128], strides = [1, 1]} : vector<12x128xi32> to vector<1x128xi32>
    %56 = vector.broadcast %55 : vector<1x128xi32> to vector<24x128xi32>
    %57 = arith.cmpi eq, %6, %56 : vector<24x128xi32>
    %58 = arith.extui %57 : vector<24x128xi1> to vector<24x128xi32>
    %59 = arith.sitofp %58 : vector<24x128xi32> to vector<24x128xf32>
    %60 = arith.truncf %59 : vector<24x128xf32> to vector<24x128xbf16>
    %61 = arith.addf %54, %60 : vector<24x128xbf16>
    %c0_21 = arith.constant 0 : index
    %c0_22 = arith.constant 0 : index
    %c0_23 = arith.constant 0 : index
    %62 = vector.load %arg6[%c0_21, %c0_22, %c0_23] : memref<4x8x24xbf16, #tpu.memory_space<vmem>>, vector<1x8x24xbf16>
    %63 = vector.shape_cast %62 : vector<1x8x24xbf16> to vector<8x24xbf16>
    %cst_24 = arith.constant dense<0.000000e+00> : vector<8x128xf32>
    %64 = tpu.matmul %63, %61, %cst_24 {dimension_numbers = #tpu.dot_dimension_numbers<[1], [0], [0], [1], [0, 0, 1, 1], [], []>} : vector<8x24xbf16>, vector<24x128xbf16>, vector<8x128xf32> -> vector<8x128xf32>
    %65 = vector.extract_strided_slice %41 {offsets = [3, 0], sizes = [1, 128], strides = [1, 1]} : vector<12x128xi32> to vector<1x128xi32>
    %66 = vector.broadcast %65 : vector<1x128xi32> to vector<24x128xi32>
    %67 = arith.cmpi eq, %6, %66 : vector<24x128xi32>
    %68 = arith.extui %67 : vector<24x128xi1> to vector<24x128xi32>
    %69 = arith.sitofp %68 : vector<24x128xi32> to vector<24x128xf32>
    %70 = arith.truncf %69 : vector<24x128xf32> to vector<24x128xbf16>
    %71 = vector.extract_strided_slice %41 {offsets = [4, 0], sizes = [1, 128], strides = [1, 1]} : vector<12x128xi32> to vector<1x128xi32>
    %72 = vector.broadcast %71 : vector<1x128xi32> to vector<24x128xi32>
    %73 = arith.cmpi eq, %6, %72 : vector<24x128xi32>
    %74 = arith.extui %73 : vector<24x128xi1> to vector<24x128xi32>
    %75 = arith.sitofp %74 : vector<24x128xi32> to vector<24x128xf32>
    %76 = arith.truncf %75 : vector<24x128xf32> to vector<24x128xbf16>
    %77 = arith.addf %70, %76 : vector<24x128xbf16>
    %78 = vector.extract_strided_slice %41 {offsets = [5, 0], sizes = [1, 128], strides = [1, 1]} : vector<12x128xi32> to vector<1x128xi32>
    %79 = vector.broadcast %78 : vector<1x128xi32> to vector<24x128xi32>
    %80 = arith.cmpi eq, %6, %79 : vector<24x128xi32>
    %81 = arith.extui %80 : vector<24x128xi1> to vector<24x128xi32>
    %82 = arith.sitofp %81 : vector<24x128xi32> to vector<24x128xf32>
    %83 = arith.truncf %82 : vector<24x128xf32> to vector<24x128xbf16>
    %84 = arith.addf %77, %83 : vector<24x128xbf16>
    %c1 = arith.constant 1 : index
    %c0_25 = arith.constant 0 : index
    %c0_26 = arith.constant 0 : index
    %85 = vector.load %arg6[%c1, %c0_25, %c0_26] : memref<4x8x24xbf16, #tpu.memory_space<vmem>>, vector<1x8x24xbf16>
    %86 = vector.shape_cast %85 : vector<1x8x24xbf16> to vector<8x24xbf16>
    %cst_27 = arith.constant dense<0.000000e+00> : vector<8x128xf32>
    %87 = tpu.matmul %86, %84, %cst_27 {dimension_numbers = #tpu.dot_dimension_numbers<[1], [0], [0], [1], [0, 0, 1, 1], [], []>} : vector<8x24xbf16>, vector<24x128xbf16>, vector<8x128xf32> -> vector<8x128xf32>
    %88 = arith.addf %64, %87 : vector<8x128xf32>
    %89 = vector.extract_strided_slice %41 {offsets = [6, 0], sizes = [1, 128], strides = [1, 1]} : vector<12x128xi32> to vector<1x128xi32>
    %90 = vector.broadcast %89 : vector<1x128xi32> to vector<24x128xi32>
    %91 = arith.cmpi eq, %6, %90 : vector<24x128xi32>
    %92 = arith.extui %91 : vector<24x128xi1> to vector<24x128xi32>
    %93 = arith.sitofp %92 : vector<24x128xi32> to vector<24x128xf32>
    %94 = arith.truncf %93 : vector<24x128xf32> to vector<24x128xbf16>
    %95 = vector.extract_strided_slice %41 {offsets = [7, 0], sizes = [1, 128], strides = [1, 1]} : vector<12x128xi32> to vector<1x128xi32>
    %96 = vector.broadcast %95 : vector<1x128xi32> to vector<24x128xi32>
    %97 = arith.cmpi eq, %6, %96 : vector<24x128xi32>
    %98 = arith.extui %97 : vector<24x128xi1> to vector<24x128xi32>
    %99 = arith.sitofp %98 : vector<24x128xi32> to vector<24x128xf32>
    %100 = arith.truncf %99 : vector<24x128xf32> to vector<24x128xbf16>
    %101 = arith.addf %94, %100 : vector<24x128xbf16>
    %102 = vector.extract_strided_slice %41 {offsets = [8, 0], sizes = [1, 128], strides = [1, 1]} : vector<12x128xi32> to vector<1x128xi32>
    %103 = vector.broadcast %102 : vector<1x128xi32> to vector<24x128xi32>
    %104 = arith.cmpi eq, %6, %103 : vector<24x128xi32>
    %105 = arith.extui %104 : vector<24x128xi1> to vector<24x128xi32>
    %106 = arith.sitofp %105 : vector<24x128xi32> to vector<24x128xf32>
    %107 = arith.truncf %106 : vector<24x128xf32> to vector<24x128xbf16>
    %108 = arith.addf %101, %107 : vector<24x128xbf16>
    %c2 = arith.constant 2 : index
    %c0_28 = arith.constant 0 : index
    %c0_29 = arith.constant 0 : index
    %109 = vector.load %arg6[%c2, %c0_28, %c0_29] : memref<4x8x24xbf16, #tpu.memory_space<vmem>>, vector<1x8x24xbf16>
    %110 = vector.shape_cast %109 : vector<1x8x24xbf16> to vector<8x24xbf16>
    %cst_30 = arith.constant dense<0.000000e+00> : vector<8x128xf32>
    %111 = tpu.matmul %110, %108, %cst_30 {dimension_numbers = #tpu.dot_dimension_numbers<[1], [0], [0], [1], [0, 0, 1, 1], [], []>} : vector<8x24xbf16>, vector<24x128xbf16>, vector<8x128xf32> -> vector<8x128xf32>
    %112 = arith.addf %88, %111 : vector<8x128xf32>
    %113 = vector.extract_strided_slice %41 {offsets = [9, 0], sizes = [1, 128], strides = [1, 1]} : vector<12x128xi32> to vector<1x128xi32>
    %114 = vector.broadcast %113 : vector<1x128xi32> to vector<24x128xi32>
    %115 = arith.cmpi eq, %6, %114 : vector<24x128xi32>
    %116 = arith.extui %115 : vector<24x128xi1> to vector<24x128xi32>
    %117 = arith.sitofp %116 : vector<24x128xi32> to vector<24x128xf32>
    %118 = arith.truncf %117 : vector<24x128xf32> to vector<24x128xbf16>
    %119 = vector.extract_strided_slice %41 {offsets = [10, 0], sizes = [1, 128], strides = [1, 1]} : vector<12x128xi32> to vector<1x128xi32>
    %120 = vector.broadcast %119 : vector<1x128xi32> to vector<24x128xi32>
    %121 = arith.cmpi eq, %6, %120 : vector<24x128xi32>
    %122 = arith.extui %121 : vector<24x128xi1> to vector<24x128xi32>
    %123 = arith.sitofp %122 : vector<24x128xi32> to vector<24x128xf32>
    %124 = arith.truncf %123 : vector<24x128xf32> to vector<24x128xbf16>
    %125 = arith.addf %118, %124 : vector<24x128xbf16>
    %126 = vector.extract_strided_slice %41 {offsets = [11, 0], sizes = [1, 128], strides = [1, 1]} : vector<12x128xi32> to vector<1x128xi32>
    %127 = vector.broadcast %126 : vector<1x128xi32> to vector<24x128xi32>
    %128 = arith.cmpi eq, %6, %127 : vector<24x128xi32>
    %129 = arith.extui %128 : vector<24x128xi1> to vector<24x128xi32>
    %130 = arith.sitofp %129 : vector<24x128xi32> to vector<24x128xf32>
    %131 = arith.truncf %130 : vector<24x128xf32> to vector<24x128xbf16>
    %132 = arith.addf %125, %131 : vector<24x128xbf16>
    %c3 = arith.constant 3 : index
    %c0_31 = arith.constant 0 : index
    %c0_32 = arith.constant 0 : index
    %133 = vector.load %arg6[%c3, %c0_31, %c0_32] : memref<4x8x24xbf16, #tpu.memory_space<vmem>>, vector<1x8x24xbf16>
    %134 = vector.shape_cast %133 : vector<1x8x24xbf16> to vector<8x24xbf16>
    %cst_33 = arith.constant dense<0.000000e+00> : vector<8x128xf32>
    %135 = tpu.matmul %134, %132, %cst_33 {dimension_numbers = #tpu.dot_dimension_numbers<[1], [0], [0], [1], [0, 0, 1, 1], [], []>} : vector<8x24xbf16>, vector<24x128xbf16>, vector<8x128xf32> -> vector<8x128xf32>
    %136 = arith.addf %112, %135 : vector<8x128xf32>
    %137 = vector.broadcast %32 : vector<1x128xf32> to vector<8x128xf32>
    %138 = arith.mulf %136, %137 : vector<8x128xf32>
    %139 = arith.addf %38, %138 : vector<8x128xf32>
    %140 = vector.broadcast %11 : vector<1x128xf32> to vector<8x128xf32>
    %141 = arith.addf %139, %140 : vector<8x128xf32>
    %142 = arith.addf %141, %5 : vector<8x128xf32>
    %c0_34 = arith.constant 0 : index
    %c0_35 = arith.constant 0 : index
    %c0_36 = arith.constant 0 : index
    %c0_37 = arith.constant 0 : index
    %143 = vector.load %arg8[%c0_34, %c0_35, %c0_36, %c0_37] : memref<1x1x8x128xf32, #tpu.memory_space<vmem>>, vector<1x1x8x128xf32>
    %144 = vector.shape_cast %143 : vector<1x1x8x128xf32> to vector<8x128xf32>
    %145 = vector.shape_cast %142 : vector<8x128xf32> to vector<1x1x8x128xf32>
    tpu.vector_store %arg8[%c0_34, %c0_35, %c0_36, %c0_37], %145 {strides = array<i32>} : memref<1x1x8x128xf32, #tpu.memory_space<vmem>>, vector<1x1x8x128xf32>,
    return
  }
  func.func @transform_0(%arg0: i32) -> (i32, i32, i32) {
    %c0_i32 = arith.constant 0 : i32
    %c0_i32_0 = arith.constant 0 : i32
    %c0_i32_1 = arith.constant 0 : i32
    return %arg0, %c0_i32, %c0_i32_0 : i32, i32, i32
  }
  func.func @transform_1(%arg0: i32) -> (i32, i32, i32) {
    %c0_i32 = arith.constant 0 : i32
    %c0_i32_0 = arith.constant 0 : i32
    %c0_i32_1 = arith.constant 0 : i32
    return %arg0, %c0_i32, %c0_i32_0 : i32, i32, i32
  }
  func.func @transform_2(%arg0: i32) -> (i32, i32, i32, i32) {
    %c0_i32 = arith.constant 0 : i32
    %c0_i32_0 = arith.constant 0 : i32
    %c0_i32_1 = arith.constant 0 : i32
    %c0_i32_2 = arith.constant 0 : i32
    return %arg0, %c0_i32, %c0_i32_0, %c0_i32_1 : i32, i32, i32, i32
  }
  func.func @transform_3(%arg0: i32) -> (i32, i32) {
    %c0_i32 = arith.constant 0 : i32
    %c0_i32_0 = arith.constant 0 : i32
    %c0_i32_1 = arith.constant 0 : i32
    return %c0_i32, %c0_i32_0 : i32, i32
  }
  func.func @transform_4(%arg0: i32) -> (i32, i32) {
    %c0_i32 = arith.constant 0 : i32
    %c0_i32_0 = arith.constant 0 : i32
    %c0_i32_1 = arith.constant 0 : i32
    return %c0_i32, %c0_i32_0 : i32, i32
  }
  func.func @transform_5(%arg0: i32) -> (i32, i32, i32) {
    %c0_i32 = arith.constant 0 : i32
    %c0_i32_0 = arith.constant 0 : i32
    %c0_i32_1 = arith.constant 0 : i32
    %c0_i32_2 = arith.constant 0 : i32
    return %c0_i32, %c0_i32_0, %c0_i32_1 : i32, i32, i32
  }
  func.func @transform_6(%arg0: i32) -> (i32, i32) {
    %c0_i32 = arith.constant 0 : i32
    %c0_i32_0 = arith.constant 0 : i32
    %c0_i32_1 = arith.constant 0 : i32
    return %c0_i32, %c0_i32_0 : i32, i32
  }
  func.func @transform_7(%arg0: i32) -> (i32, i32, i32, i32) {
    %c0_i32 = arith.constant 0 : i32
    %c0_i32_0 = arith.constant 0 : i32
    %c0_i32_1 = arith.constant 0 : i32
    %c0_i32_2 = arith.constant 0 : i32
    return %arg0, %c0_i32, %c0_i32_0, %c0_i32_1 : i32, i32, i32, i32
  }
}

</mosaic_0001>

<bundles_post_ra>
// kernel: tpu_custom_call.1
= control target key start
LH: loop header
LB: loop body
LE: loop exit
PB: predicated region body
PF: predicated region fallthrough
CT: control target
= control target key end

     0   :  { %12 = vsyncpa [#allocation3], 0  ;;  %s1477_s0 = inlined_call_operand.vmem [shape: f32[2,1,128], index: 0, kind: input, shape index: {}]   ;;  %s1478_s1 = inlined_call_operand.vmem [shape: s16[2,1,128], index: 1, kind: input, shape index: {}]   ;;  %s1479_s2 = inlined_call_operand.vmem [shape: s16[2,1,12,128], index: 2, kind: input, shape index: {}]   ;;  %s1480_s3 = inlined_call_operand.vmem [shape: f32[1,128], index: 3, kind: input, shape index: {}]   ;;  %s1481_s4 = inlined_call_operand.vmem [shape: bf16[8,16], index: 4, kind: input, shape index: {}]   ;;  %s1482_s5 = inlined_call_operand.vmem [shape: bf16[4,8,24], index: 5, kind: input, shape index: {}]   ;;  %s1483_s6 = inlined_call_operand.vmem [shape: f32[8,1], index: 6, kind: input, shape index: {}]   ;;  %s1484_s7 = inlined_call_operand.hbm [shape: f32[2,1,8,128], index: 7, kind: output, shape index: {}]  }
   0x1   :  { %14 = vsyncpa [#allocation3 + $0x1], 0  ;;  %s1175_s24 = smov 0   ;;  %s1177_s25 = smov 0  }
   0x2   :  { %s1179_s26 = smov 0   ;;  %s1181_s27 = smov 0  }
   0x3 LB: > { %s1196_s28 = sadd.s32 4294967295, %s1128_s27   ;;  %s897_s29 = sadd.s32 4294967294, %s1128_s27   ;;  %s1128_s27 = sphi %s1181_s27, %s1490_s27   ;;  %s1124_s26 = sphi %s1179_s26, %s1489_s26   ;;  %s1120_s25 = sphi %s1177_s25, %s1488_s25   ;;  %s1116_s24 = sphi %s1175_s24, %s1487_s24  }
   0x4   : > { %s1200_s30 = sadd.s32 1, %s1128_s27   ;;  %s189_s8 = sadd.s32 1, %s1124_s26 }
   0x5   : > { %s186_s9 = ssub.s32 %s1128_s27, %s1200_s30  ;;  %p199_p0 = scmp.ne.s32.totalorder %s1124_s26, %s1120_s25 }
   0x6   : > { %p187_p1 = scmp.eq.s32.totalorder %s186_s9, 0  ;;  %p200_p2 = scmp.eq.s32.totalorder %s1196_s28, 1 }
   0x7   : > { %p205_p3 = scmp.ne.s32.totalorder %s1120_s25, %s1116_s24  ;;  %p206_p4 = scmp.eq.s32.totalorder %s897_s29, 1 }
   0x8   : > { %s1211_s10 = scalar_select %p187_p1, %s1124_s26, %s189_s8  }
   0x9   : > { %p1213_p5 = por %p200_p2, %p199_p0  ;;  %p1217_p6 = por %p206_p4, %p205_p3 }
   0xa   : > { %p900_p7 = scmp.ge.s32.totalorder %s1128_s27, 1  ;;  %p256_p8 = scmp.lt.s32.totalorder %s1128_s27, 3 }
   0xc   : > { %p257_p9 = pnand %p900_p7, %p256_p8 }
   0xd   : > { %p294_p10 = scmp.lt.s32.totalorder (!%p257_p9), %s1196_s28, 1  ;;  %v321_v0 = vlaneseq (!%p257_p9)  ;;  %v1130_v1 = vmov (!%p257_p9), 0.0   ;;  %vm1131_vm0 = vmmov (!%p257_p9), 0   ;;  %v307_v3 = vld [vmem:[%s1483_s6] sm:$0xff] (!%p257_p9)  ;;  %v1132_v4 = vmov (!%p257_p9), 0   ;;  %s291_s23 = sand.u32 (!%p257_p9), 1, %s1120_s25  }
   0xe   : > { %260 = sbr.rel (%p257_p9) target bundleno = 305 (0x131), region = 48  ;;  %981 = vmatprep.subr.bf16.mxu0 (!%p257_p9), %v1130_v1  ;;  %985 = vmatprep.mubr.msk.bf16.mxu0 (!%p257_p9), %vm1131_vm0, %v1130_v1  ;;  %vm462_vm5 = vcmask (!%p257_p9), 1043456   ;;  %vm458_vm10 = vcmask (!%p257_p9), 195584   ;;  %v406_v61 = vld [vmem:[%s1482_s5] sm:$0xf] (!%p257_p9)  ;;  %s901_s29 = sshll.u32 (!%p257_p9), %s291_s23, 3 }
   0xf   : > { %v1230_v2 = vshrl.u32 (!%p257_p9), %v321_v0, 7  ;;  %973 = vmatprep.subr.bf16.mxu1 (!%p257_p9), %v1130_v1  ;;  %977 = vmatprep.mubr.msk.bf16.mxu1 (!%p257_p9), %vm1131_vm0, %v1130_v1  ;;  %s293_s14 = scalar_lea.vmem (!%p257_p9), [#allocation2], %s901_s29 }
  0x10   : > { %1063 = vset.pattern.permute.xlu0 (!%p257_p9), %v1132_v4  ;;  %s820_s15 = sshll.u32 (!%p257_p9), %s293_s14, 4  ;;  %s1437_s15 = int_to_ptr.vmem [resolvable:$true] %s820_s15 }
  0x11   : > { %v1247_v5 = vsub.s32 (!%p257_p9), 0, %v1230_v2  ;;  %v374_v6 = vsub.s32 (!%p257_p9), 1, %v1230_v2  ;;  %v391_v7 = vsub.s32 (!%p257_p9), 2, %v1230_v2  ;;  %311 = vperm.xlu0 (!%p257_p9), %1063, %v307_v3   ;;  %v554_v11 = vsub.s32 (!%p257_p9), 6, %v1230_v2  ;;  %s1066_s20 = scalar_lea.vmem (!%p257_p9), %s1437_s15, 128 }
  0x12   : > { %v569_v12 = vsub.s32 (!%p257_p9), 7, %v1230_v2  ;;  %v1256_v14 = vadd.s32 (!%p257_p9), 8, %v1230_v2  ;;  %v1263_v17 = vadd.s32 (!%p257_p9), 16, %v1230_v2  ;;  %v409_v18 = vsub.s32 (!%p257_p9), 3, %v1230_v2  ;;  %p1067_p11 = scmp.ne.s32.totalorder (!%p257_p9), %s1437_s15, %s1066_s20 }
  0x13   : > { %v424_v19 = vsub.s32 (!%p257_p9), 4, %v1230_v2  ;;  %v441_v20 = vsub.s32 (!%p257_p9), 5, %v1230_v2 }
  0x14   : > { %p1068_p12 = pnand (!%p257_p9), %p1067_p11, %p1213_p5 }
  0x15   : > { %s1228_s13 = scalar_select %p294_p10, %s1196_s28, 1 }
  0x16   : > { %p1069_p13 = pneg %p1068_p12 }
  0x17   : > { %s958_s16 = sshll.u32 %s1228_s13, 3  ;;  %s299_s19 = scalar_lea.vmem %s1478_s1, %s1228_s13 }
  0x18   : > { %s304_s22 = scalar_lea.vmem %s1479_s2, %s958_s16  ;;  %v327_v8 = vld [vmem:[%s299_s19] sm:$0x1]  ;;  %s807_s19 = scalar_lea.sflag [#allocation3], %s291_s23 }
  0x19   : > { %v353_v9 = vld [vmem:[%s304_s22] sm:$0xf]  ;;  %v354_v10 = vld [vmem:[%s304_s22 + $0x4] sm:$0x3]  ;;  %v1253_v13 = vunpack.c.l.b16 %v327_v8  ;;  %s296_s22 = scalar_lea.vmem %s1477_s0, %s1228_s13  ;;  %s955_s13 = sshll.u32 %s1196_s28, 7 }
  0x1a   : > { %v1258_v15 = vunpack.c.l.b16 %v353_v9  ;;  %v1260_v16 = vunpack.c.l.b16 %v354_v10  ;;  %s1435_s18 = scalar_lea.hbm %s1484_s7, %s955_s13  ;;  %s1134_s28 = smov [#allocation2]  }
  0x1b   : > { %v1270_v21 = vrot.slane %v1253_v13, %v1247_v5  ;;  %s1070_s21 = sshll.u32 %s1134_s28, 4  ;;  %s1071_s21 = int_to_ptr.vmem [resolvable:$false] %s1070_s21 }
  0x1c   : > { %v360_v22 = vrot.slane %v1258_v15, %v1247_v5  ;;  %v375_v23 = vrot.slane %v1258_v15, %v374_v6  ;;  %v392_v24 = vrot.slane %v1258_v15, %v391_v7  ;;  %v1277_v25 = vrot.slane %v1260_v16, %v374_v6  ;;  %p1073_p0 = scmp.lt.s32.totalorder %s1437_s15, %s1071_s21 }
  0x1d   : > { %v1280_v26 = vrot.slane %v1260_v16, %v391_v7  ;;  %v555_v27 = vrot.slane %v1258_v15, %v554_v11  ;;  %v570_v28 = vrot.slane %v1258_v15, %v569_v12  ;;  %v587_v29 = vrot.slane %v1260_v16, %v1247_v5 }
  0x1e   : > { %vm361_vm1 = vcmp.eq.s32.totalorder %v1230_v2, %v360_v22  ;;  %vm362_vm2 = vcmp.eq.s32.totalorder %v1256_v14, %v360_v22  ;;  %vm376_vm3 = vcmp.eq.s32.totalorder %v1230_v2, %v375_v23  ;;  %vm377_vm4 = vcmp.eq.s32.totalorder %v1256_v14, %v375_v23 }
  0x1f   : > { %v908_v30 = vsel %vm361_vm1, 1.0, %v1130_v1  ;;  %v909_v31 = vsel %vm362_vm2, 1.0, %v1130_v1  ;;  %v911_v32 = vsel %vm376_vm3, 1.0, %v1130_v1  ;;  %v912_v33 = vsel %vm377_vm4, 1.0, %v1130_v1 }
  0x20   : > { %v370_v34 = vpack.c.bf16 %v909_v31, %v908_v30  ;;  %v385_v35 = vpack.c.bf16 %v912_v33, %v911_v32  ;;  %vm393_vm6 = vcmp.eq.s32.totalorder %v1230_v2, %v392_v24  ;;  %vm394_vm7 = vcmp.eq.s32.totalorder %v1256_v14, %v392_v24 }
  0x21   : > { %v914_v36 = vsel %vm393_vm6, 1.0, %v1130_v1  ;;  %v915_v37 = vsel %vm394_vm7, 1.0, %v1130_v1  ;;  %vm363_vm8 = vcmp.eq.s32.totalorder %v1263_v17, %v360_v22  ;;  %vm378_vm9 = vcmp.eq.s32.totalorder %v1263_v17, %v375_v23 }
  0x22   : > { %v387_v38 = vadd.bf16 %v385_v35, %v370_v34  ;;  %v402_v39 = vpack.c.bf16 %v915_v37, %v914_v36  ;;  %v910_v40 = vsel %vm363_vm8, 1.0, %v1130_v1  ;;  %v913_v41 = vsel %vm378_vm9, 1.0, %v1130_v1 }
  0x23   : > { %v371_v42 = vpack.c.bf16 %v910_v40, %v910_v40  ;;  %v386_v43 = vpack.c.bf16 %v913_v41, %v913_v41  ;;  %vm395_vm11 = vcmp.eq.s32.totalorder %v1263_v17, %v392_v24  ;;  %vm556_vm12 = vcmp.eq.s32.totalorder %v1230_v2, %v555_v27 }
  0x24   : > { %v404_v44 = vadd.bf16 %v402_v39, %v387_v38  ;;  %v916_v45 = vsel %vm395_vm11, 1.0, %v1130_v1  ;;  %vm557_vm13 = vcmp.eq.s32.totalorder %v1256_v14, %v555_v27  ;;  %v929_v46 = vsel %vm556_vm12, 1.0, %v1130_v1 }
  0x25   : > { %v388_v47 = vadd.bf16 %v386_v43, %v371_v42  ;;  %v403_v48 = vpack.c.bf16 %v916_v45, %v916_v45  ;;  %v930_v49 = vsel %vm557_vm13, 1.0, %v1130_v1  ;;  %vm571_vm14 = vcmp.eq.s32.totalorder %v1230_v2, %v570_v28 }
  0x26   : > { %982 = vmatpush3.bf16.msra.mxu0 %v404_v44  ;;  %v565_v50 = vpack.c.bf16 %v930_v49, %v929_v46  ;;  %vm572_vm15 = vcmp.eq.s32.totalorder %v1256_v14, %v570_v28  ;;  %v932_v51 = vsel %vm571_vm14, 1.0, %v1130_v1  ;;  %vm588_vm1 = vcmp.eq.s32.totalorder %v1230_v2, %v587_v29 }
  0x27   : > { %983 = vmatprep.subr.bf16.mxu0 %v1130_v1  ;;  %v405_v52 = vadd.bf16 %v403_v48, %v388_v47  ;;  %v933_v53 = vsel %vm572_vm15, 1.0, %v1130_v1  ;;  %vm589_vm2 = vcmp.eq.s32.totalorder %v1256_v14, %v587_v29  ;;  %v935_v54 = vsel %vm588_vm1, 1.0, %v1130_v1 }
  0x28   : > { %v580_v55 = vpack.c.bf16 %v933_v53, %v932_v51  ;;  %v936_v56 = vsel %vm589_vm2, 1.0, %v1130_v1  ;;  %vm558_vm3 = vcmp.eq.s32.totalorder %v1263_v17, %v555_v27  ;;  %vm573_vm4 = vcmp.eq.s32.totalorder %v1263_v17, %v570_v28 }
  0x29   : > { %v510_v57 = vsel %vm462_vm5, %v405_v52, 0  ;;  %v597_v58 = vpack.c.bf16 %v936_v56, %v935_v54  ;;  %v931_v59 = vsel %vm558_vm3, 1.0, %v1130_v1  ;;  %v934_v60 = vsel %vm573_vm4, 1.0, %v1130_v1 }
  0x2a   : > { %984 = vmatpush3.bf16.msra.mxu0 %v510_v57  ;;  %v582_v62 = vadd.bf16 %v580_v55, %v565_v50  ;;  %v566_v63 = vpack.c.bf16 %v931_v59, %v931_v59  ;;  %v581_v0 = vpack.c.bf16 %v934_v60, %v934_v60  ;;  %vm590_vm6 = vcmp.eq.s32.totalorder %v1263_v17, %v587_v29 }
  0x2b   : > { %989 = vmatprep.subr.bf16.mxu0 %v1130_v1  ;;  %v937_v3 = vsel %vm590_vm6, 1.0, %v1130_v1  ;;  %v410_v4 = vrot.slane %v1258_v15, %v409_v18  ;;  %v425_v6 = vrot.slane %v1258_v15, %v424_v19  ;;  %v442_v7 = vrot.slane %v1258_v15, %v441_v20 }
  0x2c   : > { %v599_v8 = vadd.bf16 %v597_v58, %v582_v62  ;;  %v583_v9 = vadd.bf16 %v581_v0, %v566_v63  ;;  %v598_v10 = vpack.c.bf16 %v937_v3, %v937_v3  ;;  %vm654_vm7 = vcmp.eq.s32.totalorder %v1230_v2, %v1277_v25 }
  0x2d   : > { %986 = vmatmul.mubr.msk.bf16.vlgmr.msra.gmra.mrb[0].mxu0 %vm458_vm10, %v406_v61  ;;  %vm411_vm8 = vcmp.eq.s32.totalorder %v1230_v2, %v410_v4  ;;  %vm412_vm9 = vcmp.eq.s32.totalorder %v1256_v14, %v410_v4  ;;  %vm426_vm11 = vcmp.eq.s32.totalorder %v1230_v2, %v425_v6  ;;  %vm427_vm12 = vcmp.eq.s32.totalorder %v1256_v14, %v425_v6 }
  0x2e   : > { %990 = vmatpush3.bf16.msra.mxu0 %v599_v8  ;;  %v600_v11 = vadd.bf16 %v598_v10, %v583_v9  ;;  %v917_v12 = vsel %vm411_vm8, 1.0, %v1130_v1  ;;  %v918_v15 = vsel %vm412_vm9, 1.0, %v1130_v1  ;;  %v920_v19 = vsel %vm426_vm11, 1.0, %v1130_v1  ;;  %993 = vmatprep.mubr.msk.bf16.mxu0 %vm1131_vm0, %v1130_v1 }
  0x2f   : > { %991 = vmatprep.subr.bf16.mxu0 %v1130_v1  ;;  %v420_v20 = vpack.c.bf16 %v918_v15, %v917_v12  ;;  %v921_v22 = vsel %vm427_vm12, 1.0, %v1130_v1  ;;  %vm443_vm13 = vcmp.eq.s32.totalorder %v1230_v2, %v442_v7  ;;  %vm444_vm14 = vcmp.eq.s32.totalorder %v1256_v14, %v442_v7 }
  0x30   : > { %v607_v23 = vsel %vm462_vm5, %v600_v11, 0  ;;  %v435_v24 = vpack.c.bf16 %v921_v22, %v920_v19  ;;  %v923_v27 = vsel %vm443_vm13, 1.0, %v1130_v1  ;;  %v924_v28 = vsel %vm444_vm14, 1.0, %v1130_v1 }
  0x31   : > { %v452_v29 = vpack.c.bf16 %v924_v28, %v923_v27  ;;  %vm655_vm15 = vcmp.eq.s32.totalorder %v1256_v14, %v1277_v25  ;;  %v940_v30 = vsel %vm654_vm7, 1.0, %v1130_v1  ;;  %vm669_vm1 = vcmp.eq.s32.totalorder %v1230_v2, %v1280_v26 }
  0x32   : > { %992 = vmatpush3.bf16.msra.mxu0 %v607_v23  ;;  %v437_v31 = vadd.bf16 %v435_v24, %v420_v20  ;;  %v941_v32 = vsel %vm655_vm15, 1.0, %v1130_v1  ;;  %vm670_vm2 = vcmp.eq.s32.totalorder %v1256_v14, %v1280_v26  ;;  %v943_v33 = vsel %vm669_vm1, 1.0, %v1130_v1  ;;  %v904_v20 = vld [vmem:[%s1480_s3] ss:$0 sm:$0xff] }
  0x33   : > { %997 = vmatprep.subr.bf16.mxu0 %v1130_v1  ;;  %v663_v34 = vpack.c.bf16 %v941_v32, %v940_v30  ;;  %v944_v35 = vsel %vm670_vm2, 1.0, %v1130_v1  ;;  %v685_v36 = vrot.slane %v1260_v16, %v409_v18  ;;  %vm413_vm3 = vcmp.eq.s32.totalorder %v1263_v17, %v410_v4  ;;  %v938_v16 = vld [vmem:[%s1482_s5 + $0x8] sm:$0xf] }
  0x34   : > { %v454_v37 = vadd.bf16 %v452_v29, %v437_v31  ;;  %v678_v38 = vpack.c.bf16 %v944_v35, %v943_v33  ;;  %v919_v39 = vsel %vm413_vm3, 1.0, %v1130_v1  ;;  %vm428_vm4 = vcmp.eq.s32.totalorder %v1263_v17, %v425_v6  ;;  %v325_v6 = vld [vmem:[%s296_s22] sm:$0x1]  ;;  %s1072_s22 = scalar_lea.vmem %s1071_s21, 256 }
  0x35   : > { %vm686_vm6 = vcmp.eq.s32.totalorder %v1230_v2, %v685_v36  ;;  %vm687_vm7 = vcmp.eq.s32.totalorder %v1256_v14, %v685_v36  ;;  %v421_v40 = vpack.c.bf16 %v919_v39, %v919_v39  ;;  %v922_v41 = vsel %vm428_vm4, 1.0, %v1130_v1  ;;  %p1074_p1 = scmp.lt.s32.totalorder %s1072_s22, %s1066_s20 }
  0x36   : > { %974 = vmatpush3.bf16.msra.mxu1 %v454_v37  ;;  %v680_v18 = vadd.bf16 %v678_v38, %v663_v34  ;;  %v946_v42 = vsel %vm686_vm6, 1.0, %v1130_v1  ;;  %v947_v43 = vsel %vm687_vm7, 1.0, %v1130_v1  ;;  %v436_v44 = vpack.c.bf16 %v922_v41, %v922_v41 }
  0x37   : > { %v695_v45 = vpack.c.bf16 %v947_v43, %v946_v42  ;;  %975 = vmatprep.subr.bf16.mxu1 %v1130_v1  ;;  %vm445_vm8 = vcmp.eq.s32.totalorder %v1263_v17, %v442_v7  ;;  %vm656_vm9 = vcmp.eq.s32.totalorder %v1263_v17, %v1277_v25  ;;  %vm671_vm11 = vcmp.eq.s32.totalorder %v1263_v17, %v1280_v26  ;;  %p1075_p2 = por %p1074_p1, %p1073_p0 }
  0x38   : > { %v438_v46 = vadd.bf16 %v436_v44, %v421_v40  ;;  %v925_v47 = vsel %vm445_vm8, 1.0, %v1130_v1  ;;  %v942_v48 = vsel %vm656_vm9, 1.0, %v1130_v1  ;;  %v945_v49 = vsel %vm671_vm11, 1.0, %v1130_v1 }
  0x39   : > { %994 = vmatmul.mubr.msk.bf16.vlgmr.msra.gmra.mrb[0].mxu0 %vm458_vm10, %v938_v16  ;;  %v697_v50 = vadd.bf16 %v695_v45, %v680_v18  ;;  %v453_v51 = vpack.c.bf16 %v925_v47, %v925_v47  ;;  %v664_v52 = vpack.c.bf16 %v942_v48, %v942_v48  ;;  %v679_v53 = vpack.c.bf16 %v945_v49, %v945_v49  ;;  %p1076_p3 = pnand %p1075_p2, %p1069_p13 }
  0x3a   : > { %vm688_vm12 = vcmp.eq.s32.totalorder %v1263_v17, %v685_v36  ;;  %1001 = vmatprep.mubr.msk.bf16.mxu0 %vm1131_vm0, %v1130_v1  ;;  %vm346_vm13 = vcmp.eq.s32.totalorder %v1230_v2, %v1270_v21  ;;  %vm347_vm14 = vcmp.eq.s32.totalorder %v1256_v14, %v1270_v21  ;;  %v926_v17 = vld [vmem:[%s1482_s5 + $0x4] sm:$0xf]  ;;  %v1133_v2 = vmov 1.0|1.0   ;;  %v949_v14 = vld [vmem:[%s1482_s5 + $0xc] sm:$0xf] }
  0x3b   : > { %998 = vmatpush3.bf16.msra.mxu0 %v697_v50  ;;  %v455_v25 = vadd.bf16 %v453_v51, %v438_v46  ;;  %v681_v26 = vadd.bf16 %v679_v53, %v664_v52  ;;  %v948_v54 = vsel %vm688_vm12, 1.0, %v1130_v1  ;;  %vm951_vm15 = vmpackc.low %vm347_vm14, %vm346_vm13  ;;  %v306_v21 = vld [vmem:[%s1481_s4] sm:$0xf]  ;;  %vm329_vm1 = vcmp.eq.s32.totalorder %v1253_v13, 0 }
  0x3c   : > { %999 = vmatprep.subr.bf16.mxu0 %v1130_v1  ;;  %v696_v55 = vpack.c.bf16 %v948_v54, %v948_v54  ;;  %v330_v59 = vsel %vm329_vm1, 1, %v1253_v13  ;;  %v326_v9 = vmul.f32 2.0, %v325_v6 }
  0x3d   : > { %v464_v56 = vsel %vm462_vm5, %v455_v25, 0  ;;  %v905_v60 = vadd.s32 4294967295, %v330_v59  ;;  %vm331_vm2 = vcmp.gt.s32.totalorder %v330_v59, 1 }
  0x3e   : > { %976 = vmatpush3.bf16.msra.mxu1 %v464_v56  ;;  %v698_v57 = vadd.bf16 %v696_v55, %v681_v26  ;;  %v801_v24 = vrot.slane %v326_v9, %v1247_v5 }
  0x3f   : > { %1005 = vmatprep.subr.bf16.mxu1 %v1130_v1  ;;  %v333_v61 = vsel %vm331_vm2, %v905_v60, %v330_v59 }
  0x40   : > { %v705_v58 = vsel %vm462_vm5, %v698_v57, 0  ;;  %vm753_vm5 = vcmask 130048   ;;  %vm334_vm3 = vcmp.gt.s32.totalorder %v333_v61, 0 }
  0x41   : > { %978 = vmatmul.mubr.msk.bf16.vlgmr.msra.gmra.mrb[0].mxu1 %vm458_vm10, %v926_v17  ;;  %1000 = vmatpush3.bf16.msra.mxu0 %v705_v58  ;;  %v335_v62 = vsel %vm334_vm3, %v333_v61, 0 }
  0x42   : > { %1006 = vmatpush3.bf16.msk.msra.mxu1 %vm951_vm15, %v1133_v2  ;;  %1007 = vmatprep.mubr.msk.bf16.mxu1 %vm1131_vm0, %v1130_v1  ;;  %vm336_vm0 = vcmp.lt.s32.totalorder %v335_v62, 4 }
  0x43   : > { %v337_v1 = vsel %vm336_vm0, %v335_v62, 4 }
  0x44   : > { %v338_v63 = vcvt.s32.f32 %v337_v1 }
  0x45   : > { %1002 = vmatmul.mubr.msk.bf16.vlgmr.msra.gmra.mrb[0].mxu0 %vm458_vm10, %v949_v14 }
  0x46   : > { %v339_v0 = vmul.f32 3.0, %v338_v63 }
  0x48   : > { %1064 = vrcp.f32 %v339_v0 }
  0x49   : > { %1008 = vmatmul.mubr.msk.bf16.vlgmr.msra.gmra.mrb[4].mxu1 %vm753_vm5, %v306_v21 }
  0x52   : > { %v1065_v3 = vpop.eup %1064 }
  0x53   : > { %v751_v10 = vrot.slane %v1065_v3, %v1247_v5 }
  0x90   : > { %v312_v22 = vpop.permute.xlu0 %311 }
  0x91   : > { %v320_v31 = vmul.f32 %v904_v20, %v312_v22 }
 0x114   : > { %v500_v4 = vpop.f32.mrb[0].mxu1 }
 0x115   : > { %v979_v7 = vpop.f32.mrb[1].mxu1 }
 0x116   : > { %v503_v13 = vpop.f32.mrb[2].mxu1 }
 0x117   : > { %v980_v8 = vpop.f32.mrb[3].mxu1 }
 0x118   : > { %v741_v11 = vpop.f32.mrb[0].mxu0 }
 0x119   : > { %v1011_v12 = vadd.f32 %v741_v11, %v500_v4  ;;  %v1003_v15 = vpop.f32.mrb[1].mxu0 }
 0x11a   : > { %v744_v19 = vpop.f32.mrb[2].mxu0 }
 0x11b   : > { %v752_v23 = vmul.f32 %v1011_v12, %v751_v10  ;;  %v1004_v27 = vpop.f32.mrb[3].mxu0 }
 0x11c   : > { %v791_v28 = vpop.f32.mrb[4].mxu1 }
 0x11d   : > { %v792_v29 = vadd.f32 %v791_v28, %v752_v23  ;;  %v1009_v30 = vpop.f32.mrb[5].mxu1 }
 0x11e   : > { %v794_v32 = vpop.f32.mrb[6].mxu1 }
 0x11f   : > { %v803_v33 = vadd.f32 %v801_v24, %v792_v29  ;;  %v1010_v34 = vpop.f32.mrb[7].mxu1 }
 0x121   : > { %v804_v35 = vadd.f32 %v803_v33, %v320_v31 }
 0x123   : > { %805 = vst [vmem:[%s293_s14] sm:$0xff] %v804_v35 }
 0x124   : > { %1079 = shalt.err (!%p1076_p3)
}
 0x125   : > { %s1080_s23 = scalar_lea.hbm %s1435_s18, 128  ;;  %s1084_s9 = scalar_lea.hbm %s1484_s7, 256 }
 0x126   : > { %p1081_p4 = scmp.ne.s32.totalorder %s1435_s18, %s1080_s23  ;;  %p1085_p9 = scmp.lt.u32.totalorder %s1435_s18, %s1484_s7 }
 0x127   : > { %p1086_p10 = scmp.lt.u32.totalorder %s1084_s9, %s1080_s23  ;;  %p1088_p12 = scmp.lt.u32.totalorder %s1080_s23, %s1435_s18 }
 0x128   : > { %p1082_p7 = pnand %p1081_p4, %p1213_p5 }
 0x129   : > { %p1087_p11 = por %p1086_p10, %p1085_p9 }
 0x12a   : > { %p1083_p8 = pneg %p1082_p7 }
 0x12b   : > { %p1089_p13 = por %p1088_p12, %p1087_p11 }
 0x12d   : > { %p1090_p0 = pnand %p1089_p13, %p1083_p8 }
 0x12f   : > { %1093 = shalt.err (!%p1090_p0)
}
 0x130   : > { %1020 = dma.vmem_to_hbm [thread:$0]  (%p1213_p5), %s1437_s15, 128, %s1435_s18, %s807_s19  }
 0x131 PF: > { %p1026_p1 = scmp.ge.s32.totalorder %s1128_s27, 2  ;;  %s832_s16 = sand.u32 1, %s1116_s24  }
 0x132   : > { %s833_s17 = scalar_lea.sflag [#allocation3], %s832_s16 }
 0x133   : > { %p1023_p2 = pnand %p1026_p1, %p1217_p6 }
 0x135   : > { %1111 = dma.done.wait (!%p1023_p2), %s833_s17, 128  }
 0x136   : > { %1113 = vsyncadd (!%p1023_p2), %s833_s17, 4294967168  ;;  %p17_p3 = scmp.ge.s32.totalorder %s1200_s30, 4   ;;  %s1487_s24 = smov %s1120_s25 }
 0x137   : > { %s1488_s25 = smov %s1124_s26  ;;  %s1489_s26 = smov %s1211_s10 }
 0x138   : > { %s1490_s27 = smov %s1200_s30  ;;  %19 = sbr.rel (!%p17_p3) target bundleno = 3 (0x3), region = 92 }
 0x13f   :  { %838 = vsyncpa [#allocation3], 1 }
 0x140   :  { %840 = vsyncpa [#allocation3 + $0x1], 1 }

</bundles_post_ra>
